<compile_context>
chip_gen: v5e
topology: v5e:2x2
jax: 0.10.0
libtpu: 0.0.40
codegen_flags: <defaults>
</compile_context>

<pallas_src>
import functools
import math

import jax
import jax.numpy as jnp
from jax.experimental import pallas as pl
from jax.experimental.pallas import tpu as pltpu

_LANE = 128        # vreg lane width
_SUBLANE = 8       # f32 sublane count
_TILE_ROWS = 2048  # (2048, 128) f32 tile = 1 MiB


def _round_up(a, b):
    return ((a + b - 1) // b) * b


def _mix32(v):
    """lowbias32 avalanche hash on uint32 lanes (pure VPU int ops)."""
    v = v ^ (v >> 16)
    v = v * jnp.uint32(0x7FEB352D)
    v = v ^ (v >> 15)
    v = v * jnp.uint32(0x846CA68B)
    v = v ^ (v >> 16)
    return v


def _noise_kernel(seed_ref, x_ref, o_ref, *, std):
    """o = x + std * N(0,1); noise keyed on (seed, global flat element index)."""
    tile_r, tile_c = x_ref.shape          # static block shape
    i = pl.program_id(0)

    # Global flat index of every element of this tile -> per-block decorrelated
    # noise that is also invariant to the tiling choice.
    row = jax.lax.broadcasted_iota(jnp.int32, (tile_r, tile_c), 0)
    col = jax.lax.broadcasted_iota(jnp.int32, (tile_r, tile_c), 1)
    gidx = ((i * tile_r + row) * tile_c + col).astype(jnp.uint32)

    seed = seed_ref[0].astype(jnp.uint32)

    # Two independent counter-hash streams -> two 24-bit uniforms.
    k1 = _mix32(gidx ^ (seed * jnp.uint32(0x9E3779B1)))
    k2 = _mix32((gidx ^ jnp.uint32(0x632BE59B)) + (seed * jnp.uint32(0x85EBCA77)))

    inv24 = jnp.float32(1.0 / (1 << 24))
    u1 = ((k1 >> 8).astype(jnp.int32).astype(jnp.float32) + 0.5) * inv24   # (0, 1)
    u2 = (k2 >> 8).astype(jnp.int32).astype(jnp.float32) * inv24           # [0, 1)

    # Box-Muller -> standard normal (exact, 2 transcendentals / element).
    r = jnp.sqrt(-2.0 * jnp.log(u1))
    z = r * jnp.cos(jnp.float32(2.0 * math.pi) * u2)

    o_ref[...] = (x_ref[...].astype(jnp.float32)
                  + jnp.float32(std) * z).astype(o_ref.dtype)


def noise_forward(x, std, seed, training=True):
    """JAX/Pallas equivalent of Noise(std).forward(x)."""
    if not training:
        return x

    orig_shape = x.shape
    orig_dtype = x.dtype
    total = x.size
    if total == 0:
        return x

    rows = total // _LANE
    if total % _LANE == 0 and rows >= _SUBLANE:
        # Fast path: metadata-only reshape, no pad / slice HBM round trips.
        x2d = x.reshape(rows, _LANE)
        tile_r = min(_TILE_ROWS, (rows // _SUBLANE) * _SUBLANE)
        pad = 0
    else:
        # TODO(synk): rare ragged/tiny case keeps one pad+slice round trip.
        rows = _round_up(pl.cdiv(total, _LANE), _SUBLANE)
        pad = rows * _LANE - total
        x2d = jnp.pad(x.reshape(-1), (0, pad)).reshape(rows, _LANE)
        tile_r = min(_TILE_ROWS, rows)

    grid = (pl.cdiv(rows, tile_r),)
    seed_arr = jnp.asarray([seed], dtype=jnp.int32)

    itemsize = jnp.dtype(orig_dtype).itemsize
    cost = pl.CostEstimate(
        flops=30 * total,                # integer hashing + scale/add
        transcendentals=2 * total,       # log + cos per element
        bytes_accessed=2 * total * itemsize,
    )

    out = pl.pallas_call(
        functools.partial(_noise_kernel, std=float(std)),
        out_shape=jax.ShapeDtypeStruct((rows, _LANE), orig_dtype),
        grid=grid,
        in_specs=[
            pl.BlockSpec(memory_space=pltpu.MemorySpace.SMEM),   # seed scalar
            pl.BlockSpec((tile_r, _LANE), lambda i: (i, 0)),     # x tile
        ],
        out_specs=pl.BlockSpec((tile_r, _LANE), lambda i: (i, 0)),
        compiler_params=pltpu.CompilerParams(
            dimension_semantics=("parallel",),   # independent tiles -> megacore
        ),
        cost_estimate=cost,
    )(seed_arr, x2d)

    if pad:
        out = out.reshape(-1)[:total]
    return out.reshape(orig_shape)


if __name__ == "__main__":
    std = 0.1
    key = jax.random.PRNGKey(0)
    k1, k2 = jax.random.split(key)

    # Small NCHW feature map consistent with the module's usage.
    x = jax.random.normal(k1, (2, 4, 16, 16), dtype=jnp.float32)

    y_train = jax.block_until_ready(noise_forward(x, std, seed=0, training=True))
    y_eval = jax.block_until_ready(noise_forward(x, std, seed=0, training=False))

    assert y_train.shape == x.shape and y_train.dtype == x.dtype
    assert bool(jnp.all(y_eval == x))

    z = (y_train - x) / std                     # recovered unit-normal noise
    assert float(jnp.max(jnp.abs(z))) > 0.0
    assert float(jnp.max(jnp.abs(z))) < 8.0
    assert abs(float(jnp.mean(z))) < 0.15
    assert 0.8 < float(jnp.std(z)) < 1.2

    # Multi-tile path (grid > 1, parallel axis); tiles must be decorrelated.
    xb = jax.random.normal(k2, (4, 8, 128, 128), dtype=jnp.float32)
    yb = jax.block_until_ready(noise_forward(xb, std, seed=7, training=True))
    zb = ((yb - xb) / std).reshape(-1, _LANE)
    assert not bool(jnp.allclose(zb[:_TILE_ROWS], zb[_TILE_ROWS:2 * _TILE_ROWS]))
    assert 0.9 < float(jnp.std(zb)) < 1.1

    # Ragged-size fallback (total % 128 != 0).
    xr = jax.random.normal(k2, (2, 3, 5, 7), dtype=jnp.float32)
    yr = jax.block_until_ready(noise_forward(xr, std, seed=3, training=True))
    assert yr.shape == xr.shape and yr.dtype == xr.dtype

    print("KERNEL_OK")
</pallas_src>

<mosaic_0001>
module attributes {stable_mosaic.version = 11 : i64} {
  func.func @_noise_kernel(%arg0: i32, %arg1: memref<1xi32, #tpu.memory_space<smem>>, %arg2: memref<16x128xf32, #tpu.memory_space<vmem>>, %arg3: memref<16x128xf32, #tpu.memory_space<vmem>>) attributes {dimension_semantics = [#tpu.dimension_semantics<parallel>], iteration_bounds = array<i64: 1>, scalar_prefetch = 0 : i64, scratch_operands = 0 : i64, tpu.core_type = #tpu.core_type<tc>, window_params = [{transform_indices = @transform_0, window_bounds = array<i64: 1>}, {transform_indices = @transform_1, window_bounds = array<i64: 16, 128>}, {transform_indices = @transform_2, window_bounds = array<i64: 16, 128>}]} {
    %0 = tpu.iota {dimensions = array<i32: 0>} : vector<16x128xi32>
    %1 = tpu.iota {dimensions = array<i32: 1>} : vector<16x128xi32>
    %c16_i32 = arith.constant 16 : i32
    %2 = arith.muli %arg0, %c16_i32 : i32
    %3 = vector.broadcast %2 : i32 to vector<16x128xi32>
    %4 = arith.addi %3, %0 : vector<16x128xi32>
    %c128_i32 = arith.constant 128 : i32
    %5 = vector.broadcast %c128_i32 : i32 to vector<16x128xi32>
    %6 = arith.muli %4, %5 : vector<16x128xi32>
    %7 = arith.addi %6, %1 : vector<16x128xi32>
    %c0 = arith.constant 0 : index
    %8 = memref.load %arg1[%c0] : memref<1xi32, #tpu.memory_space<smem>>
    %c-1640531535_i32 = arith.constant -1640531535 : i32
    %9 = arith.muli %8, %c-1640531535_i32 : i32
    %10 = vector.broadcast %9 : i32 to vector<16x128xi32>
    %11 = arith.xori %7, %10 : vector<16x128xi32>
    %c16_i32_0 = arith.constant 16 : i32
    %12 = vector.broadcast %c16_i32_0 : i32 to vector<16x128xi32>
    %13 = arith.shrui %11, %12 : vector<16x128xi32>
    %14 = arith.xori %11, %13 : vector<16x128xi32>
    %c2146121005_i32 = arith.constant 2146121005 : i32
    %15 = vector.broadcast %c2146121005_i32 : i32 to vector<16x128xi32>
    %16 = arith.muli %14, %15 : vector<16x128xi32>
    %c15_i32 = arith.constant 15 : i32
    %17 = vector.broadcast %c15_i32 : i32 to vector<16x128xi32>
    %18 = arith.shrui %16, %17 : vector<16x128xi32>
    %19 = arith.xori %16, %18 : vector<16x128xi32>
    %c-2073254261_i32 = arith.constant -2073254261 : i32
    %20 = vector.broadcast %c-2073254261_i32 : i32 to vector<16x128xi32>
    %21 = arith.muli %19, %20 : vector<16x128xi32>
    %c16_i32_1 = arith.constant 16 : i32
    %22 = vector.broadcast %c16_i32_1 : i32 to vector<16x128xi32>
    %23 = arith.shrui %21, %22 : vector<16x128xi32>
    %24 = arith.xori %21, %23 : vector<16x128xi32>
    %c1663821211_i32 = arith.constant 1663821211 : i32
    %25 = vector.broadcast %c1663821211_i32 : i32 to vector<16x128xi32>
    %26 = arith.xori %7, %25 : vector<16x128xi32>
    %c-2048144777_i32 = arith.constant -2048144777 : i32
    %27 = arith.muli %8, %c-2048144777_i32 : i32
    %28 = vector.broadcast %27 : i32 to vector<16x128xi32>
    %29 = arith.addi %26, %28 : vector<16x128xi32>
    %c16_i32_2 = arith.constant 16 : i32
    %30 = vector.broadcast %c16_i32_2 : i32 to vector<16x128xi32>
    %31 = arith.shrui %29, %30 : vector<16x128xi32>
    %32 = arith.xori %29, %31 : vector<16x128xi32>
    %c2146121005_i32_3 = arith.constant 2146121005 : i32
    %33 = vector.broadcast %c2146121005_i32_3 : i32 to vector<16x128xi32>
    %34 = arith.muli %32, %33 : vector<16x128xi32>
    %c15_i32_4 = arith.constant 15 : i32
    %35 = vector.broadcast %c15_i32_4 : i32 to vector<16x128xi32>
    %36 = arith.shrui %34, %35 : vector<16x128xi32>
    %37 = arith.xori %34, %36 : vector<16x128xi32>
    %c-2073254261_i32_5 = arith.constant -2073254261 : i32
    %38 = vector.broadcast %c-2073254261_i32_5 : i32 to vector<16x128xi32>
    %39 = arith.muli %37, %38 : vector<16x128xi32>
    %c16_i32_6 = arith.constant 16 : i32
    %40 = vector.broadcast %c16_i32_6 : i32 to vector<16x128xi32>
    %41 = arith.shrui %39, %40 : vector<16x128xi32>
    %42 = arith.xori %39, %41 : vector<16x128xi32>
    %c8_i32 = arith.constant 8 : i32
    %43 = vector.broadcast %c8_i32 : i32 to vector<16x128xi32>
    %44 = arith.shrui %24, %43 : vector<16x128xi32>
    %45 = arith.sitofp %44 : vector<16x128xi32> to vector<16x128xf32>
    %cst = arith.constant 5.000000e-01 : f32
    %46 = vector.broadcast %cst : f32 to vector<16x128xf32>
    %47 = arith.addf %45, %46 : vector<16x128xf32>
    %cst_7 = arith.constant 5.96046448E-8 : f32
    %48 = vector.broadcast %cst_7 : f32 to vector<16x128xf32>
    %49 = arith.mulf %47, %48 : vector<16x128xf32>
    %c8_i32_8 = arith.constant 8 : i32
    %50 = vector.broadcast %c8_i32_8 : i32 to vector<16x128xi32>
    %51 = arith.shrui %42, %50 : vector<16x128xi32>
    %52 = arith.sitofp %51 : vector<16x128xi32> to vector<16x128xf32>
    %cst_9 = arith.constant 5.96046448E-8 : f32
    %53 = vector.broadcast %cst_9 : f32 to vector<16x128xf32>
    %54 = arith.mulf %52, %53 : vector<16x128xf32>
    %55 = math.log %49 : vector<16x128xf32>
    %cst_10 = arith.constant -2.000000e+00 : f32
    %56 = vector.broadcast %cst_10 : f32 to vector<16x128xf32>
    %57 = arith.mulf %56, %55 : vector<16x128xf32>
    %58 = math.sqrt %57 : vector<16x128xf32>
    %cst_11 = arith.constant 6.28318548 : f32
    %59 = vector.broadcast %cst_11 : f32 to vector<16x128xf32>
    %60 = arith.mulf %59, %54 : vector<16x128xf32>
    %61 = math.cos %60 : vector<16x128xf32>
    %62 = arith.mulf %58, %61 : vector<16x128xf32>
    %c0_12 = arith.constant 0 : index
    %c0_13 = arith.constant 0 : index
    %63 = vector.load %arg2[%c0_12, %c0_13] : memref<16x128xf32, #tpu.memory_space<vmem>>, vector<16x128xf32>
    %cst_14 = arith.constant 1.000000e-01 : f32
    %64 = vector.broadcast %cst_14 : f32 to vector<16x128xf32>
    %65 = arith.mulf %64, %62 : vector<16x128xf32>
    %66 = arith.addf %63, %65 : vector<16x128xf32>
    %c0_15 = arith.constant 0 : index
    %c0_16 = arith.constant 0 : index
    %67 = vector.load %arg3[%c0_15, %c0_16] : memref<16x128xf32, #tpu.memory_space<vmem>>, vector<16x128xf32>
    tpu.vector_store %arg3[%c0_15, %c0_16], %66 {strides = array<i32>} : memref<16x128xf32, #tpu.memory_space<vmem>>, vector<16x128xf32>,
    return
  }
  func.func @transform_0(%arg0: i32) -> i32 {
    %c0_i32 = arith.constant 0 : i32
    %c0_i32_0 = arith.constant 0 : i32
    return %c0_i32 : i32
  }
  func.func @transform_1(%arg0: i32) -> (i32, i32) {
    %c0_i32 = arith.constant 0 : i32
    %c0_i32_0 = arith.constant 0 : i32
    return %arg0, %c0_i32 : i32, i32
  }
  func.func @transform_2(%arg0: i32) -> (i32, i32) {
    %c0_i32 = arith.constant 0 : i32
    %c0_i32_0 = arith.constant 0 : i32
    return %arg0, %c0_i32 : i32, i32
  }
}

</mosaic_0001>

<bundles_post_ra>
// kernel: tpu_custom_call.1
= control target key start
LH: loop header
LB: loop body
LE: loop exit
PB: predicated region body
PF: predicated region fallthrough
CT: control target
= control target key end

     0   :  { %8 = vsyncpa [#allocation4], 0  ;;  %s803_s0 = inlined_call_operand.<no memory space> [shape: s32[1], index: 0, kind: input, shape index: {}]   ;;  %s804_s1 = inlined_call_operand.hbm [shape: f32[16,128], index: 1, kind: input, shape index: {}]   ;;  %s805_s2 = inlined_call_operand.hbm [shape: f32[16,128], index: 2, kind: output, shape index: {}]  }
   0x1   :  { %9 = vsyncpa [#allocation5], 0  ;;  %s16_s11 = sshll.u32 %s804_s1, 4  ;;  %s545_s12 = smov [#allocation3]   ;;  %s17_s11 = int_to_ptr.hbm [resolvable:$true] %s16_s11 }
   0x2   :  { %s18_s13 = sshll.u32 %s545_s12, 4  ;;  %s546_s14 = smov 128   ;;  %s19_s13 = int_to_ptr.vmem [resolvable:$true] %s18_s13 }
   0x3   :  { %s547_s15 = smov 8  }
   0x4   :  { %24 = dma.hbm_to_vmem [thread:$0]  %s17_s11, 256, %s19_s13, [#allocation4], %s546_s14, %s546_s14, %s547_s15  }
   0x5   :  { %541 = dma.done.wait [#allocation4], 256  }
   0x6   :  { %542 = vsyncadd [#allocation4], 4294967040  ;;  %v29_v0 = vlaneseq  ;;  %s43_s18 = smul.u32 2654435761, %s803_s0  ;;  %s455_s24 = sshll.u32 %s805_s2, 4  ;;  %s456_s24 = int_to_ptr.hbm [resolvable:$true] %s455_s24 }
   0x7   :  { %s65_s20 = smul.u32 2246822519, %s803_s0  ;;  %s555_s0 = smov [#allocation6]  }
   0x8   :  { %v30_v1 = vshrl.u32 %v29_v0, 7  ;;  %v33_v2 = vand.u32 127, %v29_v0  ;;  %v44_v7 = vstv %s43_s18  ;;  %s453_s21 = sshll.u32 %s555_s0, 4  ;;  %s454_s21 = int_to_ptr.vmem [resolvable:$true] %s453_s21 }
   0x9   :  { %v66_v8 = vstv %s65_s20 }
   0xa   :  { %v31_v3 = vadd.s32 8, %v30_v1  ;;  %v38_v4 = vmul.u32 128, %v30_v1 }
   0xc   :  { %v39_v5 = vmul.u32 128, %v31_v3  ;;  %v40_v6 = vadd.s32 %v38_v4, %v33_v2  ;;  %v548_v4 = vmov 683565275  }
   0xe   :  { %v41_v9 = vadd.s32 %v39_v5, %v33_v2  ;;  %v63_v10 = vxor.u32 1663821211, %v40_v6  ;;  %v45_v11 = vxor.u32 %v44_v7, %v40_v6  ;;  %v549_v6 = vmov 2475754826  }
  0x10   :  { %v64_v12 = vxor.u32 1663821211, %v41_v9  ;;  %v67_v13 = vadd.s32 %v66_v8, %v63_v10  ;;  %v47_v16 = vshrl.u32 %v45_v11, 16  ;;  %v46_v42 = vxor.u32 %v44_v7, %v41_v9 }
  0x11   :  { %v551_v10 = vmov 2102212464  }
  0x12   :  { %v68_v14 = vadd.s32 %v66_v8, %v64_v12  ;;  %v69_v15 = vshrl.u32 %v67_v13, 16  ;;  %v49_v21 = vxor.u32 %v47_v16, %v45_v11  ;;  %v48_v48 = vshrl.u32 %v46_v42, 16 }
  0x13   :  { %v550_v8 = vmov 2131351028   ;;  %v552_v12 = vmov 920167782  }
  0x14   :  { %v70_v17 = vshrl.u32 %v68_v14, 16  ;;  %v71_v18 = vxor.u32 %v69_v15, %v67_v13  ;;  %v51_v26 = vmul.u32 2146121005, %v49_v21  ;;  %v50_v53 = vxor.u32 %v48_v48, %v46_v42 }
  0x16   :  { %v72_v19 = vxor.u32 %v70_v17, %v68_v14  ;;  %v73_v20 = vmul.u32 2146121005, %v71_v18  ;;  %v53_v31 = vshrl.u32 %v51_v26, 15  ;;  %v52_v58 = vmul.u32 2146121005, %v50_v53 }
  0x18   :  { %v74_v22 = vmul.u32 2146121005, %v72_v19  ;;  %v75_v23 = vshrl.u32 %v73_v20, 15  ;;  %v55_v36 = vxor.u32 %v53_v31, %v51_v26  ;;  %v54_v0 = vshrl.u32 %v52_v58, 15 }
  0x1a   :  { %v76_v24 = vshrl.u32 %v74_v22, 15  ;;  %v77_v25 = vxor.u32 %v75_v23, %v73_v20  ;;  %v57_v41 = vmul.u32 2221713035, %v55_v36  ;;  %v553_v20 = vmov 1326507024  }
  0x1b   :  { %v607_v23 = vxor.u32 %v54_v0, %v52_v58 }
  0x1c   :  { %v78_v27 = vxor.u32 %v76_v24, %v74_v22  ;;  %v79_v28 = vmul.u32 2221713035, %v77_v25  ;;  %v59_v46 = vshrl.u32 %v57_v41, 16 }
  0x1e   :  { %v80_v29 = vmul.u32 2221713035, %v78_v27  ;;  %v81_v30 = vshrl.u32 %v79_v28, 16  ;;  %v61_v51 = vxor.u32 %v59_v46, %v57_v41 }
  0x20   :  { %v82_v32 = vshrl.u32 %v80_v29, 16  ;;  %v83_v33 = vxor.u32 %v81_v30, %v79_v28  ;;  %v85_v57 = vshrl.u32 %v61_v51, 8 }
  0x22   :  { %v84_v34 = vxor.u32 %v82_v32, %v80_v29  ;;  %v93_v35 = vshrl.u32 %v83_v33, 8  ;;  %v87_v62 = vcvt.s32.f32 %v85_v57 }
  0x24   :  { %v94_v37 = vshrl.u32 %v84_v34, 8  ;;  %v95_v38 = vcvt.s32.f32 %v93_v35  ;;  %v89_v15 = vadd.f32 0.5, %v87_v62 }
  0x26   :  { %v96_v39 = vcvt.s32.f32 %v94_v37  ;;  %v97_v40 = vmul.f32 5.9604645e-08, %v95_v38  ;;  %v91_v31 = vmul.f32 5.9604645e-08, %v89_v15 }
  0x28   :  { %v98_v43 = vmul.f32 5.9604645e-08, %v96_v39  ;;  %v583_v44 = vmul.f32 6.2831855, %v97_v40  ;;  %485 = vlog2.f32 %v91_v31 }
  0x2a   :  { %v585_v45 = vmul.f32 6.2831855, %v98_v43  ;;  %v134_v47 = vand.u32 2139095040, %v583_v44  ;;  %v131_v54 = vand.u32 2147483647, %v583_v44 }
  0x2b   :  { %v58_v43 = vmul.u32 2221713035, %v607_v23 }
  0x2c   :  { %v135_v49 = vshrl.u32 %v134_v47, 23  ;;  %v288_v50 = vand.u32 2139095040, %v585_v45  ;;  %v138_v59 = vand.u32 8388607, %v131_v54  ;;  %v285_v29 = vand.u32 2147483647, %v585_v45 }
  0x2e   :  { %v468_v52 = vadd.s32 4294967169, %v135_v49  ;;  %v289_v56 = vshrl.u32 %v288_v50, 23  ;;  %v139_v1 = vor.u32 8388608, %v138_v59  ;;  %v626_v42 = vand.u32 8388607, %v285_v29 }
  0x30   :  { %v141_v55 = vadd.s32 1, %v468_v52  ;;  %v471_v61 = vadd.s32 4294967169, %v289_v56  ;;  %v605_v22 = vshll.u32 %v139_v1, 8  ;;  %v293_v59 = vor.u32 8388608, %v626_v42 }
  0x32   :  { %vm142_vm0 = vcmp.gt.s32.totalorder %v141_v55, 0  ;;  %v295_v14 = vadd.s32 1, %v471_v61  ;;  %v180_v34 = vand.u32 65535, %v605_v22  ;;  %v181_v41 = vshrl.u32 %v605_v22, 16 }
  0x33   :  { %v143_v60 = vsel %vm142_vm0, %v141_v55, 0 }
  0x34   :  { %v145_v63 = vand.u32 31, %v143_v60  ;;  %v592_v2 = vshrl.u32 %v143_v60, 5  ;;  %vm296_vm2 = vcmp.gt.s32.totalorder %v295_v14, 0 }
  0x35   :  { %v297_v38 = vsel %vm296_vm2, %v295_v14, 0  ;;  %v646_v14 = vpop.eup %485 }
  0x36   :  { %v146_v3 = vsub.s32 32, %v145_v63  ;;  %v148_v5 = vshll.u32 %v548_v4, %v145_v63  ;;  %v151_v7 = vshll.u32 %v549_v6, %v145_v63  ;;  %v154_v9 = vshll.u32 %v550_v8, %v145_v63 }
  0x37   :  { %v157_v11 = vshll.u32 %v551_v10, %v145_v63  ;;  %v160_v13 = vshll.u32 %v552_v12, %v145_v63  ;;  %vm163_vm1 = vcmp.lt.s32.totalorder %v592_v2, 1  ;;  %vm164_vm3 = vcmp.lt.s32.totalorder %v592_v2, 2 }
  0x38   :  { %v149_v16 = vshrl.u32 %v549_v6, %v146_v3  ;;  %v152_v17 = vshrl.u32 %v550_v8, %v146_v3  ;;  %v155_v18 = vshrl.u32 %v551_v10, %v146_v3  ;;  %v158_v19 = vshrl.u32 %v552_v12, %v146_v3 }
  0x39   :  { %v161_v21 = vshrl.u32 %v553_v20, %v146_v3  ;;  %vm165_vm4 = vcmp.lt.s32.totalorder %v592_v2, 3  ;;  %vm166_vm5 = vcmp.lt.s32.totalorder %v592_v2, 4  ;;  %v147_v32 = vshrl.u32 %v548_v4, %v146_v3 }
  0x3a   :  { %v150_v24 = vor.u32 %v149_v16, %v148_v5  ;;  %v153_v25 = vor.u32 %v152_v17, %v151_v7  ;;  %v156_v26 = vor.u32 %v155_v18, %v154_v9  ;;  %v159_v27 = vor.u32 %v158_v19, %v157_v11 }
  0x3b   :  { %v162_v28 = vor.u32 %v161_v21, %v160_v13  ;;  %v299_v51 = vand.u32 31, %v297_v38  ;;  %v638_v63 = vshrl.u32 %v297_v38, 5  ;;  %v554_v19 = vmov 0  }
  0x3c   :  { %v171_v30 = vsel %vm163_vm1, %v150_v24, %v153_v25  ;;  %v172_v33 = vsel %vm166_vm5, %v159_v27, 920167782  ;;  %v175_v36 = vsel %vm163_vm1, %v153_v25, %v156_v26  ;;  %v168_v39 = vsel %vm166_vm5, %v156_v26, 2102212464 }
  0x3d   :  { %v173_v35 = vsel %vm165_vm4, %v156_v26, %v172_v33  ;;  %v176_v37 = vsel %vm166_vm5, %v162_v28, 1326507024  ;;  %v167_v49 = vsel %vm163_vm1, %v147_v32, %v150_v24  ;;  %v169_v52 = vsel %vm165_vm4, %v153_v25, %v168_v39 }
  0x3e   :  { %v174_v40 = vsel %vm164_vm3, %v171_v30, %v173_v35  ;;  %v177_v46 = vsel %vm165_vm4, %v159_v27, %v176_v37  ;;  %v642_v0 = vsel %vm164_vm3, %v167_v49, %v169_v52  ;;  %v644_v5 = vsub.s32 32, %v299_v51 }
  0x3f   :  { %v204_v47 = vand.u32 65535, %v174_v40  ;;  %v205_v48 = vshrl.u32 %v174_v40, 16  ;;  %v178_v50 = vsel %vm164_vm3, %v175_v36, %v177_v46  ;;  %v302_v27 = vshll.u32 %v548_v4, %v299_v51 }
  0x40   :  { %v182_v53 = vand.u32 65535, %v178_v50  ;;  %v183_v55 = vshrl.u32 %v178_v50, 16  ;;  %v303_v33 = vshrl.u32 %v549_v6, %v644_v5  ;;  %v306_v37 = vshrl.u32 %v550_v8, %v644_v5 }
  0x41   :  { %v207_v56 = vmul.u32 %v205_v48, %v180_v34  ;;  %v206_v57 = vmul.u32 %v204_v47, %v180_v34  ;;  %v208_v58 = vmul.u32 %v204_v47, %v181_v41  ;;  %v209_v1 = vmul.u32 %v205_v48, %v181_v41 }
  0x42   :  { %v184_v60 = vmul.u32 %v182_v53, %v180_v34  ;;  %v185_v61 = vmul.u32 %v183_v55, %v180_v34  ;;  %v186_v62 = vmul.u32 %v182_v53, %v181_v41  ;;  %v187_v7 = vmul.u32 %v183_v55, %v181_v41 }
  0x43   :  { %v210_v3 = vshll.u32 %v207_v56, 16  ;;  %v211_v13 = vshrl.u32 %v207_v56, 16  ;;  %v212_v17 = vshll.u32 %v208_v58, 16  ;;  %v213_v25 = vshrl.u32 %v208_v58, 16 }
  0x44   :  { %v188_v9 = vshll.u32 %v185_v61, 16  ;;  %v190_v11 = vshll.u32 %v186_v62, 16  ;;  %v189_v15 = vshrl.u32 %v185_v61, 16  ;;  %v191_v16 = vshrl.u32 %v186_v62, 16 }
  0x45   :  { %vm214_vm6 = vc.u32 %v206_v57, %v210_v3  ;;  %v216_v21 = vadd.s32 %v210_v3, %v206_v57  ;;  %v305_v34 = vshll.u32 %v549_v6, %v299_v51  ;;  %v308_v38 = vshll.u32 %v550_v8, %v299_v51 }
  0x46   :  { %vm192_vm7 = vc.u32 %v184_v60, %v188_v9  ;;  %v194_v18 = vadd.s32 %v188_v9, %v184_v60  ;;  %v215_v2 = vsel %vm214_vm6, 1, %v554_v19  ;;  %v661_v39 = vor.u32 %v303_v33, %v302_v27 }
  0x47   :  { %v193_v24 = vsel %vm192_vm7, 1, %v554_v19  ;;  %v217_v26 = vadd.s32 %v215_v2, %v209_v1  ;;  %vm218_vm9 = vc.u32 %v216_v21, %v212_v17  ;;  %v651_v30 = vadd.s32 %v216_v21, %v212_v17 }
  0x48   :  { %v195_v28 = vadd.s32 %v193_v24, %v187_v7  ;;  %vm196_vm8 = vc.u32 %v194_v18, %v190_v11  ;;  %v219_v32 = vsel %vm218_vm9, 1, %v554_v19  ;;  %v309_v40 = vshrl.u32 %v551_v10, %v644_v5 }
  0x49   :  { %v197_v31 = vsel %vm196_vm8, 1, %v554_v19  ;;  %v221_v36 = vadd.s32 %v219_v32, %v217_v26  ;;  %v311_v41 = vshll.u32 %v551_v10, %v299_v51  ;;  %v312_v42 = vshrl.u32 %v552_v12, %v644_v5 }
  0x4a   :  { %v199_v35 = vadd.s32 %v197_v31, %v195_v28  ;;  %v668_v6 = vor.u32 %v306_v37, %v305_v34  ;;  %v314_v48 = vshll.u32 %v552_v12, %v299_v51  ;;  %v671_v49 = vor.u32 %v309_v40, %v308_v38 }
  0x4b   :  { %v222_v47 = vadd.s32 %v221_v36, %v211_v13  ;;  %v313_v50 = vor.u32 %v312_v42, %v311_v41  ;;  %v315_v8 = vshrl.u32 %v553_v20, %v644_v5  ;;  %vm317_vm10 = vcmp.lt.s32.totalorder %v638_v63, 1 }
  0x4c   :  { %v200_v46 = vadd.s32 %v199_v35, %v189_v15  ;;  %v60_v10 = vshrl.u32 %v58_v43, 16  ;;  %v680_v55 = vshll.u32 %v293_v59, 8  ;;  %v224_v56 = vmul.u32 %v605_v22, %v642_v0 }
  0x4d   :  { %v223_v53 = vadd.s32 %v222_v47, %v213_v25  ;;  %v316_v12 = vor.u32 %v315_v8, %v314_v48  ;;  %vm319_vm11 = vcmp.lt.s32.totalorder %v638_v63, 3  ;;  %vm320_vm12 = vcmp.lt.s32.totalorder %v638_v63, 4 }
  0x4e   :  { %v678_v52 = vadd.s32 %v200_v46, %v191_v16  ;;  %vm318_vm14 = vcmp.lt.s32.totalorder %v638_v63, 2  ;;  %v325_v51 = vsel %vm317_vm10, %v661_v39, %v668_v6  ;;  %v326_v57 = vsel %vm320_vm12, %v313_v50, 920167782 }
  0x4f   :  { %v227_v20 = vadd.s32 1, %v223_v53  ;;  %v329_v22 = vsel %vm317_vm10, %v668_v6, %v671_v49  ;;  %v330_v58 = vsel %vm320_vm12, %v316_v12, 1326507024  ;;  %v62_v59 = vxor.u32 %v60_v10, %v58_v43 }
  0x50   :  { %vm226_vm13 = vc.u32 %v678_v52, %v651_v30  ;;  %v327_v61 = vsel %vm319_vm11, %v671_v49, %v326_v57  ;;  %v331_v62 = vsel %vm319_vm11, %v313_v50, %v330_v58  ;;  %v334_v7 = vand.u32 65535, %v680_v55 }
  0x51   :  { %v228_v60 = vsel %vm226_vm13, %v227_v20, %v223_v53  ;;  %v328_v1 = vsel %vm318_vm14, %v325_v51, %v327_v61  ;;  %v332_v3 = vsel %vm318_vm14, %v329_v22, %v331_v62  ;;  %v335_v23 = vshrl.u32 %v680_v55, 16 }
  0x52   :  { %v229_v0 = vadd.s32 %v228_v60, %v224_v56  ;;  %v336_v43 = vand.u32 65535, %v332_v3  ;;  %v337_v11 = vshrl.u32 %v332_v3, 16  ;;  %v358_v13 = vand.u32 65535, %v328_v1 }
  0x53   :  { %v359_v15 = vshrl.u32 %v328_v1, 16  ;;  %v86_v16 = vshrl.u32 %v62_v59, 8  ;;  %v100_v17 = vmul.f32 0.6931472, %v646_v14  ;;  %v301_v48 = vshrl.u32 %v548_v4, %v644_v5 }
  0x54   :  { %v230_v9 = vadd.s32 536870912, %v229_v0  ;;  %v340_v18 = vmul.u32 %v336_v43, %v335_v23  ;;  %v338_v21 = vmul.u32 %v336_v43, %v334_v7  ;;  %v339_v24 = vmul.u32 %v337_v11, %v334_v7 }
  0x55   :  { %v360_v25 = vmul.u32 %v358_v13, %v334_v7  ;;  %v361_v26 = vmul.u32 %v359_v15, %v334_v7  ;;  %v362_v27 = vmul.u32 %v358_v13, %v335_v23  ;;  %v341_v31 = vmul.u32 %v337_v11, %v335_v23 }
  0x56   :  { %v715_v2 = vshrl.u32 %v230_v9, 30  ;;  %v342_v32 = vshll.u32 %v339_v24, 16  ;;  %v344_v33 = vshll.u32 %v340_v18, 16  ;;  %v88_v34 = vcvt.s32.f32 %v86_v16 }
  0x57   :  { %v718_v35 = vmul.f32 -2.0, %v100_v17  ;;  %v364_v36 = vshll.u32 %v361_v26, 16  ;;  %v363_v38 = vmul.u32 %v359_v15, %v335_v23  ;;  %v343_v40 = vshrl.u32 %v339_v24, 16 }
  0x58   :  { %v232_v28 = vshll.u32 %v715_v2, 30  ;;  %vm346_vm15 = vc.u32 %v338_v21, %v342_v32  ;;  %v348_v14 = vadd.s32 %v342_v32, %v338_v21  ;;  %v366_v42 = vshll.u32 %v362_v27, 16 }
  0x59   :  { %v347_v41 = vsel %vm346_vm15, 1, %v554_v19  ;;  %vm368_vm0 = vc.u32 %v360_v25, %v364_v36  ;;  %v370_v10 = vadd.s32 %v364_v36, %v360_v25  ;;  %v322_v56 = vsel %vm320_vm12, %v671_v49, 2102212464 }
  0x5a   :  { %v233_v37 = vsub.s32 %v229_v0, %v232_v28  ;;  %v349_v47 = vadd.s32 %v347_v41, %v341_v31  ;;  %vm350_vm2 = vc.u32 %v348_v14, %v344_v33  ;;  %v369_v8 = vsel %vm368_vm0, 1, %v554_v19 }
  0x5b   :  { %v351_v50 = vsel %vm350_vm2, 1, %v554_v19  ;;  %v371_v20 = vadd.s32 %v369_v8, %v363_v38  ;;  %v345_v57 = vshrl.u32 %v340_v18, 16  ;;  %v365_v22 = vshrl.u32 %v361_v26, 16 }
  0x5c   :  { %vm234_vm1 = vcmp.lt.s32.totalorder %v233_v37, 0  ;;  %v235_v46 = vsub.s32 0, %v233_v37  ;;  %v353_v12 = vadd.s32 %v351_v50, %v349_v47  ;;  %vm372_vm3 = vc.u32 %v370_v10, %v366_v42 }
  0x5d   :  { %v373_v59 = vsel %vm372_vm3, 1, %v554_v19  ;;  %v321_v5 = vsel %vm317_vm10, %v301_v48, %v661_v39  ;;  %v323_v60 = vsel %vm319_vm11, %v668_v6, %v322_v56  ;;  %v90_v49 = vadd.f32 0.5, %v88_v34 }
  0x5e   :  { %v236_v53 = vsel %vm234_vm1, %v235_v46, %v233_v37  ;;  %v354_v58 = vadd.s32 %v353_v12, %v343_v40  ;;  %v375_v61 = vadd.s32 %v373_v59, %v371_v20  ;;  %487 = vrsqrt.f32 %v718_v35 }
  0x5f   :  { %v237_v51 = vclz %v236_v53  ;;  %v225_v62 = vadd.s32 %v651_v30, %v678_v52  ;;  %v367_v0 = vshrl.u32 %v362_v27, 16  ;;  %v374_v19 = vadd.s32 %v370_v10, %v366_v42 }
  0x60   :  { %v355_v1 = vadd.s32 %v354_v58, %v345_v57  ;;  %v376_v3 = vadd.s32 %v375_v61, %v365_v22  ;;  %v324_v39 = vsel %vm318_vm14, %v321_v5, %v323_v60  ;;  %v92_v6 = vmul.f32 5.9604645e-08, %v90_v49 }
  0x61   :  { %v469_v4 = vadd.s32 4294967294, %v237_v51  ;;  %v378_v16 = vmul.u32 %v680_v55, %v324_v39  ;;  %vm133_vm6 = vcmp.lt.s32.totalorder %v583_v44, 0  ;;  %vm747_vm7 = vcmp.le.f32.partialorder %v131_v54, 0.7853982 }
  0x62   :  { %v377_v11 = vadd.s32 %v376_v3, %v367_v0  ;;  %vm380_vm5 = vc.u32 %v355_v1, %v374_v19  ;;  %489 = vlog2.f32 %v92_v6  ;;  %v255_v42 = vsub.s32 4, %v715_v2 }
  0x63   :  { %vm470_vm4 = vcmp.lt.s32.totalorder %v469_v4, 0  ;;  %v379_v5 = vadd.s32 %v374_v19, %v355_v1  ;;  %vm112_vm10 = vcmp.eq.f32.partialorder %v718_v35, inf  ;;  %vm114_vm12 = vcmp.eq.f32.partialorder %v718_v35, 0.0 }
  0x64   :  { %v240_v7 = vsel %vm470_vm4, 0, %v469_v4  ;;  %v488_v30 = vpop.eup %487  ;;  %v381_v52 = vadd.s32 1, %v377_v11  ;;  %v256_v56 = vsel %vm133_vm6, %v255_v42, %v715_v2  ;;  %vm274_vm15 = vweird.f32 %v583_v44 }
  0x65   :  { %v241_v23 = vsub.s32 32, %v240_v7  ;;  %v242_v43 = vshll.u32 %v233_v37, %v240_v7  ;;  %v245_v9 = vsub.s32 4294967266, %v240_v7  ;;  %v106_v26 = vmul.f32 %v488_v30, %v718_v35 }
  0x66   :  { %v382_v21 = vsel %vm380_vm5, %v381_v52, %v377_v11  ;;  %v258_v22 = vsel %vm747_vm7, 0, %v256_v56  ;;  %vm287_vm0 = vcmp.lt.s32.totalorder %v585_v45, 0  ;;  %vm776_vm1 = vcmp.le.f32.partialorder %v285_v29, 0.7853982 }
  0x67   :  { %v243_v13 = vshrl.u32 %v225_v62, %v241_v23  ;;  %v246_v15 = vadd.s32 127, %v245_v9  ;;  %v383_v63 = vadd.s32 %v382_v21, %v378_v16  ;;  %v107_v33 = vmul.f32 %v488_v30, %v106_v26 }
  0x68   :  { %v490_v55 = vpop.eup %489  ;;  %v275_v62 = vand.u32 3, %v258_v22 }
  0x69   :  { %v244_v17 = vor.u32 %v243_v13, %v242_v43  ;;  %v247_v18 = vshll.u32 %v246_v15, 23  ;;  %v384_v28 = vadd.s32 536870912, %v383_v63  ;;  %v102_v40 = vmul.f32 0.6931472, %v490_v55 }
  0x6a   :  { %v108_v41 = vmul.f32 0.5, %v107_v33  ;;  %vm280_vm11 = vcmp.eq.s32.totalorder %v275_v62, 2  ;;  %v115_v15 = vand.u32 2147483648, %v718_v35  ;;  %vm277_vm13 = vcmp.eq.s32.totalorder %v275_v62, 0 }
  0x6b   :  { %v248_v24 = vor.u32 4788187, %v247_v18  ;;  %v251_v25 = vcvt.s32.f32 %v244_v17  ;;  %v742_v32 = vshrl.u32 %v384_v28, 30  ;;  %v758_v10 = vmul.f32 -2.0, %v102_v40 }
  0x6c   :  { %v109_v53 = vsub.f32 1.5, %v108_v41  ;;  %vm276_vm14 = vcmp.lt.s32.totalorder %v275_v62, 2 }
  0x6d   :  { %v249_v27 = vand.u32 2147483647, %v248_v24  ;;  %v386_v37 = vshll.u32 %v742_v32, 30  ;;  %491 = vrsqrt.f32 %v758_v10  ;;  %v409_v40 = vsub.s32 4, %v742_v32 }
  0x6e   :  { %v110_v4 = vmul.f32 %v488_v30, %v109_v53  ;;  %vm124_vm2 = vcmp.eq.f32.partialorder %v758_v10, inf  ;;  %vm126_vm4 = vcmp.eq.f32.partialorder %v758_v10, 0.0 }
  0x6f   :  { %v252_v31 = vmul.f32 %v251_v25, %v249_v27  ;;  %v387_v38 = vsub.s32 %v383_v63, %v386_v37  ;;  %v441_v37 = vld [vmem:[#allocation3] sm:$0xff] }
  0x70   :  { %v111_v23 = vmul.f32 %v110_v4, %v718_v35 }
  0x71   :  { %v253_v36 = vxor.u32 2147483648, %v252_v31  ;;  %vm388_vm8 = vcmp.lt.s32.totalorder %v387_v38, 0  ;;  %v389_v54 = vsub.s32 0, %v387_v38 }
  0x72   :  { %v113_v52 = vsel %vm112_vm10, %v718_v35, %v111_v23 }
  0x73   :  { %v254_v14 = vsel %vm133_vm6, %v253_v36, %v252_v31  ;;  %v390_v8 = vsel %vm388_vm8, %v389_v54, %v387_v38  ;;  %v492_v13 = vpop.eup %491  ;;  %v116_v26 = vsel %vm114_vm12, %v115_v15, %v113_v52 }
  0x74   :  { %v257_v46 = vsel %vm747_vm7, %v583_v44, %v254_v14  ;;  %v391_v12 = vclz %v390_v8  ;;  %v118_v21 = vmul.f32 %v492_v13, %v758_v10  ;;  %vm428_vm7 = vweird.f32 %v585_v45 }
  0x75   :  { %v259_v47 = vmul.f32 %v257_v46, %v257_v46 }
  0x76   :  { %v472_v57 = vadd.s32 4294967294, %v391_v12  ;;  %v119_v33 = vmul.f32 %v492_v13, %v118_v21 }
  0x77   :  { %v260_v48 = vmul.f32 -0.001358992, %v259_v47  ;;  %v267_v50 = vmul.f32 -0.00019511016, %v259_v47 }
  0x78   :  { %vm473_vm9 = vcmp.lt.s32.totalorder %v472_v57, 0 }
  0x79   :  { %v261_v20 = vadd.f32 0.041655596, %v260_v48  ;;  %v268_v51 = vadd.f32 0.008332121, %v267_v50  ;;  %v394_v49 = vsel %vm473_vm9, 0, %v472_v57  ;;  %v410_v48 = vsel %vm287_vm0, %v409_v40, %v742_v32 }
  0x7a   :  { %v395_v0 = vsub.s32 32, %v394_v49  ;;  %v396_v2 = vshll.u32 %v387_v38, %v394_v49  ;;  %v399_v3 = vsub.s32 4294967266, %v394_v49  ;;  %v120_v38 = vmul.f32 0.5, %v119_v33 }
  0x7b   :  { %v262_v58 = vmul.f32 %v261_v20, %v259_v47  ;;  %v269_v59 = vmul.f32 %v268_v51, %v259_v47  ;;  %v412_v53 = vsel %vm776_vm1, 0, %v410_v48  ;;  %v127_v32 = vand.u32 2147483648, %v758_v10 }
  0x7c   :  { %v397_v43 = vshrl.u32 %v379_v5, %v395_v0  ;;  %v400_v9 = vadd.s32 127, %v399_v3  ;;  %v121_v54 = vsub.f32 1.5, %v120_v38  ;;  %v429_v22 = vand.u32 3, %v412_v53 }
  0x7d   :  { %v263_v60 = vadd.f32 -0.4999988, %v262_v58  ;;  %v270_v61 = vadd.f32 -0.16666654, %v269_v59 }
  0x7e   :  { %v398_v1 = vor.u32 %v397_v43, %v396_v2  ;;  %v401_v19 = vshll.u32 %v400_v9, 23  ;;  %v122_v20 = vmul.f32 %v492_v13, %v121_v54  ;;  %vm434_vm3 = vcmp.eq.s32.totalorder %v429_v22, 2  ;;  %v442_v9 = vld [vmem:[#allocation3 + $0x8] sm:$0xff] }
  0x7f   :  { %v264_v7 = vmul.f32 %v263_v60, %v259_v47  ;;  %v271_v39 = vmul.f32 %v270_v61, %v259_v47  ;;  %vm431_vm5 = vcmp.eq.s32.totalorder %v429_v22, 0  ;;  %vm430_vm6 = vcmp.lt.s32.totalorder %v429_v22, 2 }
  0x80   :  { %v402_v17 = vor.u32 4788187, %v401_v19  ;;  %v405_v18 = vcvt.s32.f32 %v398_v1  ;;  %v123_v4 = vmul.f32 %v122_v20, %v758_v10 }
  0x81   :  { %v265_v6 = vadd.f32 1.0, %v264_v7  ;;  %v272_v11 = vadd.f32 1.0, %v271_v39 }
  0x82   :  { %v403_v63 = vand.u32 2147483647, %v402_v17  ;;  %v125_v62 = vsel %vm124_vm2, %v758_v10, %v123_v4 }
  0x83   :  { %v273_v16 = vmul.f32 %v272_v11, %v257_v46  ;;  %v281_v30 = vxor.u32 2147483648, %v265_v6  ;;  %v128_v3 = vsel %vm126_vm4, %v127_v32, %v125_v62 }
  0x84   :  { %v406_v31 = vmul.f32 %v405_v18, %v403_v63 }
  0x85   :  { %v278_v24 = vxor.u32 2147483648, %v273_v16  ;;  %v282_v25 = vsel %vm280_vm11, %v281_v30, %v273_v16 }
  0x86   :  { %v407_v34 = vxor.u32 2147483648, %v406_v31 }
  0x87   :  { %v279_v27 = vsel %vm277_vm13, %v265_v6, %v278_v24 }
  0x88   :  { %v283_v28 = vsel %vm276_vm14, %v279_v27, %v282_v25  ;;  %v408_v44 = vsel %vm287_vm0, %v407_v34, %v406_v31 }
  0x89   :  { %v284_v55 = vsel %vm274_vm15, nan, %v283_v28  ;;  %v411_v41 = vsel %vm776_vm1, %v585_v45, %v408_v44 }
  0x8a   :  { %v439_v36 = vmul.f32 %v284_v55, %v116_v26  ;;  %v413_v42 = vmul.f32 %v411_v41, %v411_v41 }
  0x8c   :  { %v443_v14 = vmul.f32 0.1, %v439_v36  ;;  %v414_v29 = vmul.f32 -0.001358992, %v413_v42  ;;  %v421_v47 = vmul.f32 -0.00019511016, %v413_v42 }
  0x8e   :  { %v445_v46 = vadd.f32 %v443_v14, %v441_v37  ;;  %v415_v50 = vadd.f32 0.041655596, %v414_v29  ;;  %v422_v8 = vadd.f32 0.008332121, %v421_v47 }
  0x90   :  { %447 = vst [vmem:[#allocation6] sm:$0xff] %v445_v46  ;;  %v416_v56 = vmul.f32 %v415_v50, %v413_v42  ;;  %v423_v12 = vmul.f32 %v422_v8, %v413_v42 }
  0x92   :  { %v417_v51 = vadd.f32 -0.4999988, %v416_v56  ;;  %v424_v57 = vadd.f32 -0.16666654, %v423_v12 }
  0x94   :  { %v418_v58 = vmul.f32 %v417_v51, %v413_v42  ;;  %v425_v59 = vmul.f32 %v424_v57, %v413_v42 }
  0x96   :  { %v419_v5 = vadd.f32 1.0, %v418_v58  ;;  %v426_v60 = vadd.f32 1.0, %v425_v59 }
  0x98   :  { %v427_v61 = vmul.f32 %v426_v60, %v411_v41  ;;  %v435_v49 = vxor.u32 2147483648, %v419_v5 }
  0x9a   :  { %v432_v0 = vxor.u32 2147483648, %v427_v61  ;;  %v436_v2 = vsel %vm434_vm3, %v435_v49, %v427_v61 }
  0x9c   :  { %v433_v7 = vsel %vm431_vm5, %v419_v5, %v432_v0 }
  0x9d   :  { %v437_v39 = vsel %vm430_vm6, %v433_v7, %v436_v2 }
  0x9e   :  { %v438_v23 = vsel %vm428_vm7, nan, %v437_v39 }
  0x9f   :  { %v440_v43 = vmul.f32 %v438_v23, %v128_v3 }
  0xa1   :  { %v444_v6 = vmul.f32 0.1, %v440_v43 }
  0xa3   :  { %v446_v10 = vadd.f32 %v444_v6, %v442_v9 }
  0xa5   :  { %448 = vst [vmem:[#allocation6 + $0x8] sm:$0xff] %v446_v10 }
  0xa6   :  { %461 = dma.vmem_to_hbm [thread:$0]  %s454_s21, 256, %s456_s24, [#allocation5], %s546_s14, %s546_s14, %s547_s15  }
  0xa7   :  { %543 = dma.done.wait [#allocation5], 256  }
  0xa8   :  { %544 = vsyncadd [#allocation5], 4294967040 }
  0xa9   :  { %466 = vsyncpa [#allocation4], 1 }
  0xaa   :  { %467 = vsyncpa [#allocation5], 1 }

</bundles_post_ra>
